<compile_context>
chip_gen: v7x
topology: tpu7x:2x2x1
jax: 0.10.0
libtpu: 0.0.40
codegen_flags: <defaults>
</compile_context>

<pallas_src>
import functools

import jax
import jax.numpy as jnp
from jax.experimental import pallas as pl
from jax.experimental.pallas import tpu as pltpu


def _sigmoid_mean_kernel(w_ref, mw_ref, *, num_classes):
    """mw[0, f] = mean_c(sigmoid(W[c, f])) over the FULL class dimension."""
    w = w_ref[...]
    if w.dtype != jnp.float32:
        w = w.astype(jnp.float32)
    nw = jax.nn.sigmoid(w)                                   # EUP
    # Use the wrapper-supplied full C, not the block shape, so this stays a
    # true mean even if the class dim were ever tiled.
    inv_c = 1.0 / num_classes
    mw_ref[...] = (jnp.sum(nw, axis=0, keepdims=True) * inv_c).astype(mw_ref.dtype)


def _scale_kernel(feat_ref, mw_ref, out_ref):
    """out[b, f] = features[b, f] * mean_sigmoid_weight[f]."""
    out_ref[...] = (feat_ref[...] * mw_ref[...]).astype(out_ref.dtype)


def neuron_prober(features, probe_weights, *, tb=512, tf=2048,
                  out_dtype=None, core_parallel=False):
    """features: (B, F), probe_weights: (C, F) -> (B, F).

    out[b, f] = features[b, f] * mean_c(sigmoid(probe_weights[c, f]))
    """
    B, F = features.shape
    C, F2 = probe_weights.shape
    assert F == F2, "feature dims of features and probe_weights must match"
    out_dtype = out_dtype or features.dtype

    # ---- Tile selection ------------------------------------------------
    # Feature tile: lane-dense (multiple of 128). If F itself is not a
    # multiple of 128, a full-F block is the only legal (and still correct)
    # choice; it only costs masked stores on the ragged lanes.
    if F % 128 == 0:
        TF = min(F, max(128, (tf // 128) * 128))
    else:
        TF = F
    nF = pl.cdiv(F, TF)

    # Batch tile rounded to sublane packing: 8 rows for f32, 16 for bf16,
    # 32 for int8/fp8.  A tile equal to the full batch is always legal.
    sub = max(8, 32 // jnp.dtype(features.dtype).itemsize)
    TB = min(B, tb)
    if TB != B:
        TB = max(sub, (TB // sub) * sub)
    nB = pl.cdiv(B, TB)

    # ---- Stage 1: mean_c(sigmoid(W)) -> (1, F), emitted in feature dtype ----
    mw_dtype = features.dtype
    mw = pl.pallas_call(
        functools.partial(_sigmoid_mean_kernel, num_classes=C),
        out_shape=jax.ShapeDtypeStruct((1, F), mw_dtype),
        grid=(nF,),
        in_specs=[pl.BlockSpec((C, TF), lambda j: (0, j))],
        out_specs=pl.BlockSpec((1, TF), lambda j: (0, j)),
    )(probe_weights)

    # ---- Stage 2: tiled broadcast multiply ------------------------------
    itemsize_in = jnp.dtype(features.dtype).itemsize
    itemsize_out = jnp.dtype(out_dtype).itemsize
    itemsize_mw = jnp.dtype(mw_dtype).itemsize
    # Double-buffered feature + output tiles plus the (tiny) weight-vector tile.
    approx_vmem = 2 * TB * TF * (itemsize_in + itemsize_out) + 2 * TF * itemsize_mw
    need = int(approx_vmem * 1.3) + (1 << 20)        # +30% headroom + scratch slack
    vmem_limit = need if need > 12 * 1024 * 1024 else None

    # Batch and feature tiles are fully independent.  On v7x, pass
    # core_parallel=True to shard the batch-tile axis across both TensorCores.
    batch_sem = pltpu.CORE_PARALLEL if core_parallel else "parallel"

    return pl.pallas_call(
        _scale_kernel,
        out_shape=jax.ShapeDtypeStruct((B, F), out_dtype),
        grid=(nB, nF),
        in_specs=[
            pl.BlockSpec((TB, TF), lambda i, j: (i, j)),   # batch/feature-tiled features
            pl.BlockSpec((1, TF), lambda i, j: (0, j)),    # precomputed weight vector
        ],
        out_specs=pl.BlockSpec((TB, TF), lambda i, j: (i, j)),
        compiler_params=pltpu.CompilerParams(
            dimension_semantics=(batch_sem, "parallel"),
            vmem_limit_bytes=vmem_limit,
        ),
    )(features, mw)


def neuron_prober_ref(features, probe_weights):
    nw = jax.nn.sigmoid(probe_weights)                       # (C, F)
    csf = features[:, None, :] * nw[None, :, :]              # (B, C, F)
    return jnp.mean(csf, axis=1)                             # (B, F)


if __name__ == "__main__":
    num_classes = 9
    num_features = 128
    batch = 8

    key = jax.random.PRNGKey(0)
    k_feat, k_w = jax.random.split(key)

    # Deterministic synthetic parameters: torch.rand -> uniform [0, 1)
    probe_weights = jax.random.uniform(
        k_w, (num_classes, num_features), dtype=jnp.float32
    )
    features = jax.random.normal(k_feat, (batch, num_features), dtype=jnp.float32)

    out = jax.block_until_ready(neuron_prober(features, probe_weights))

    ref = neuron_prober_ref(features, probe_weights)
    assert out.shape == (batch, num_features)
    assert jnp.allclose(out, ref, atol=1e-5, rtol=1e-5), "mismatch vs reference"

    print("KERNEL_OK")
</pallas_src>

<mosaic_0001>
module attributes {stable_mosaic.version = 11 : i64} {
  func.func @_sigmoid_mean_kernel(%arg0: i32, %arg1: memref<9x128xf32, #tpu.memory_space<vmem>>, %arg2: memref<1x128xf32, #tpu.memory_space<vmem>>) attributes {dimension_semantics = [#tpu.dimension_semantics<arbitrary>], iteration_bounds = array<i64: 1>, scalar_prefetch = 0 : i64, scratch_operands = 0 : i64, tpu.core_type = #tpu.core_type<tc>, window_params = [{transform_indices = @transform_0, window_bounds = array<i64: 9, 128>}, {transform_indices = @transform_1, window_bounds = array<i64: 1, 128>}]} {
    %c0 = arith.constant 0 : index
    %c0_0 = arith.constant 0 : index
    %0 = vector.load %arg1[%c0, %c0_0] : memref<9x128xf32, #tpu.memory_space<vmem>>, vector<9x128xf32>
    %1 = arith.negf %0 : vector<9x128xf32>
    %2 = math.exp %1 : vector<9x128xf32>
    %cst = arith.constant 1.000000e+00 : f32
    %3 = vector.broadcast %cst : f32 to vector<9x128xf32>
    %4 = arith.addf %3, %2 : vector<9x128xf32>
    %5 = arith.divf %3, %4 : vector<9x128xf32>
    %cst_1 = arith.constant dense<0.000000e+00> : vector<128xf32>
    %6 = vector.multi_reduction <add>, %5, %cst_1 [0] : vector<9x128xf32> to vector<128xf32>
    %7 = vector.shape_cast %6 : vector<128xf32> to vector<1x128xf32>
    %cst_2 = arith.constant 0.111111112 : f32
    %8 = vector.broadcast %cst_2 : f32 to vector<1x128xf32>
    %9 = arith.mulf %7, %8 : vector<1x128xf32>
    %c0_3 = arith.constant 0 : index
    %c0_4 = arith.constant 0 : index
    %10 = vector.load %arg2[%c0_3, %c0_4] : memref<1x128xf32, #tpu.memory_space<vmem>>, vector<1x128xf32>
    tpu.vector_store %arg2[%c0_3, %c0_4], %9 {strides = array<i32>} : memref<1x128xf32, #tpu.memory_space<vmem>>, vector<1x128xf32>,
    return
  }
  func.func @transform_0(%arg0: i32) -> (i32, i32) {
    %c0_i32 = arith.constant 0 : i32
    %c0_i32_0 = arith.constant 0 : i32
    return %c0_i32, %arg0 : i32, i32
  }
  func.func @transform_1(%arg0: i32) -> (i32, i32) {
    %c0_i32 = arith.constant 0 : i32
    %c0_i32_0 = arith.constant 0 : i32
    return %c0_i32, %arg0 : i32, i32
  }
}

</mosaic_0001>

<bundles_post_ra>
// kernel: tpu_custom_call.1
= control target key start
LH: loop header
LB: loop body
LE: loop exit
PB: predicated region body
PF: predicated region fallthrough
CT: control target
= control target key end

     0   :  { %6 = vsyncpa [#allocation3], 0  ;;  %s163_s0 = inlined_call_operand.hbm [shape: f32[9,128], index: 0, kind: input, shape index: {}]   ;;  %s164_s1 = inlined_call_operand.hbm [shape: f32[1,128], index: 1, kind: output, shape index: {}]  }
   0x1   :  { %7 = vsyncpa [#allocation4], 0  ;;  %s125_s6 = smov [#allocation2]   ;;  %s77_s10 = scalar_lea.hbm %s163_s0, 256 }
   0x2   :  { %s13_s7 = sshll.u32 %s125_s6, 4  ;;  %p78_p0 = scmp.ne.s32.totalorder %s163_s0, %s77_s10  ;;  %s14_s7 = int_to_ptr.vmem [resolvable:$true] %s13_s7 }
   0x3   :  { %p81_p1 = scmp.lt.u32.totalorder %s77_s10, %s163_s0 }
   0x5   :  { %p83_p2 = pnand %p81_p1, %p78_p0 }
   0x7   :  { %86 = shalt.err (!%p83_p2)
}
   0x8   :  { %s87_s15 = scalar_lea.vmem %s14_s7, 256  ;;  %p92_p4 = scmp.lt.s32.totalorder %s14_s7, %s14_s7 }
   0x9   :  { %p88_p3 = scmp.ne.s32.totalorder %s14_s7, %s87_s15  ;;  %p93_p5 = scmp.lt.s32.totalorder %s87_s15, %s87_s15 }
   0xb   :  { %p94_p6 = por %p93_p5, %p92_p4 }
   0xd   :  { %p95_p7 = pnand %p94_p6, %p88_p3 }
   0xf   :  { %98 = shalt.err (!%p95_p7)
}
  0x10   :  { %s126_s16 = smov 128   ;;  %s127_s17 = smov 8  }
  0x11   :  { %19 = dma.hbm_to_vmem [thread:$0]  %s163_s0, 256, %s14_s7, [#allocation3], %s126_s16, %s126_s16, %s127_s17  }
  0x12   :  { %121 = dma.done.wait [#allocation3], 256  }
  0x13   :  { %122 = vsyncadd [#allocation3], 4294967040  ;;  %v23_v0 = vld [vmem:[#allocation2] sm:$0xff]  ;;  %v24_v1 = vld [vmem:[#allocation2 + $0x8] sm:$0x1]  ;;  %vm37_vm0 = vcmask 1040384  }
  0x14   :  { %v63_v2 = vmul.f32 -1.442695, %v23_v0  ;;  %v64_v3 = vmul.f32 -1.442695, %v24_v1  ;;  %s128_s0 = smov [#allocation5]  }
  0x15   :  { %s54_s20 = sshll.u32 %s128_s0, 4  ;;  %s55_s20 = int_to_ptr.vmem [resolvable:$true] %s54_s20 }
  0x16   :  { %69 = vpow2.f32 %v63_v2  ;;  %s99_s21 = scalar_lea.vmem %s55_s20, 16  ;;  %s103_s22 = scalar_lea.vmem %s55_s20, 32 }
  0x17   :  { %71 = vpow2.f32 %v64_v3  ;;  %p100_p8 = scmp.ne.s32.totalorder %s55_s20, %s99_s21  ;;  %p104_p9 = scmp.lt.s32.totalorder %s55_s20, %s55_s20 }
  0x18   :  { %p105_p10 = scmp.lt.s32.totalorder %s103_s22, %s99_s21 }
  0x1a   :  { %p106_p11 = por %p105_p10, %p104_p9 }
  0x1c   :  { %p107_p12 = pnand %p106_p11, %p100_p8 }
  0x20   :  { %v70_v4 = vpop.eup %69 }
  0x21   :  { %v72_v5 = vpop.eup %71  ;;  %v31_v6 = vadd.f32 1.0, %v70_v4 }
  0x22   :  { %v32_v7 = vadd.f32 1.0, %v72_v5 }
  0x23   :  { %73 = vrcp.f32 %v31_v6 }
  0x24   :  { %75 = vrcp.f32 %v32_v7 }
  0x2d   :  { %v74_v8 = vpop.eup %73 }
  0x2e   :  { %v76_v9 = vpop.eup %75 }
  0x2f   :  { %v38_v10 = vsel %vm37_vm0, %v76_v9, 0.0 }
  0x30   :  { %v39_v11 = vadd.f32 %v74_v8, %v38_v10 }
  0x32   :  { %v40_v12 = vrot.slane %v39_v11, 4 }
  0x34   :  { %v41_v13 = vadd.f32 %v40_v12, %v39_v11 }
  0x36   :  { %v42_v14 = vrot.slane %v41_v13, 2 }
  0x38   :  { %v43_v15 = vadd.f32 %v42_v14, %v41_v13 }
  0x3a   :  { %v44_v16 = vrot.slane %v43_v15, 1 }
  0x3c   :  { %v45_v17 = vadd.f32 %v44_v16, %v43_v15 }
  0x3e   :  { %v46_v18 = vmul.f32 0.11111111, %v45_v17 }
  0x40   :  { %47 = vst [vmem:[#allocation5] sm:$0x1] %v46_v18 }
  0x41   :  { %110 = shalt.err (!%p107_p12)
}
  0x42   :  { %s111_s25 = scalar_lea.hbm %s164_s1, 16 }
  0x43   :  { %p112_p13 = scmp.ne.s32.totalorder %s164_s1, %s111_s25  ;;  %p115_p0 = scmp.lt.u32.totalorder %s111_s25, %s164_s1 }
  0x45   :  { %p117_p1 = pnand %p115_p0, %p112_p13 }
  0x47   :  { %120 = shalt.err (!%p117_p1)
}
  0x48   :  { %57 = dma.vmem_to_hbm [thread:$0]  %s55_s20, 16, %s164_s1, [#allocation4]  }
  0x49   :  { %123 = dma.done.wait [#allocation4], 16  }
  0x4a   :  { %124 = vsyncadd [#allocation4], 4294967280 }
  0x4b   :  { %61 = vsyncpa [#allocation3], 1 }
  0x4c   :  { %62 = vsyncpa [#allocation4], 1 }

</bundles_post_ra>
